<compile_context>
chip_gen: v6e
topology: v6e:2x2x1
jax: 0.10.0
libtpu: 0.0.40
codegen_flags: <defaults>
</compile_context>

<pallas_src>
import numpy as np
import jax
import jax.numpy as jnp
from jax.experimental import pallas as pl
from jax.experimental.pallas import tpu as pltpu

EPS = 1e-8


def _bilinear_matrix(out_size, in_size):
    """Interpolation matrix matching PyTorch bilinear upsample (align_corners=False)."""
    i = np.arange(out_size, dtype=np.float64)
    src = (i + 0.5) * (in_size / out_size) - 0.5
    src = np.maximum(src, 0.0)
    i0 = np.floor(src).astype(np.int64)
    i0 = np.minimum(i0, in_size - 1)
    i1 = np.minimum(i0 + 1, in_size - 1)
    lam = src - i0
    W = np.zeros((out_size, in_size), dtype=np.float64)
    W[np.arange(out_size), i0] += (1.0 - lam)
    W[np.arange(out_size), i1] += lam
    return jnp.asarray(W, dtype=jnp.float32)


def irmse_kernel(fake_ref, real_ref, wh_ref, wwt_ref, sum_ref, cnt_ref, t_ref):
    """Grid = (group, h_tile). Outputs are (1, 8, W) lane-dense partial accumulators."""
    hi = pl.program_id(1)

    B, tH, W = real_ref.shape          # static block shape
    nsub = tH // 8

    @pl.when(hi == 0)
    def _init():
        # W-direction upsample once per image group: one flat MXU matmul.
        f = fake_ref[...].astype(jnp.float32)                     # (B, Hin, Win)
        b_, hin_, win_ = f.shape
        t = jnp.dot(f.reshape(b_ * hin_, win_), wwt_ref[...],
                    preferred_element_type=jnp.float32)           # (B*Hin, W)
        t_ref[...] = t.reshape(t_ref.shape)                       # (B, Hin, W)
        sum_ref[...] = jnp.zeros_like(sum_ref)
        cnt_ref[...] = jnp.zeros_like(cnt_ref)

    wh = wh_ref[...]                                              # (tH, Hin) f32

    sum_acc = jnp.zeros((8, W), jnp.float32)
    cnt_acc = jnp.zeros((8, W), jnp.float32)
    for b in range(B):                                            # static unroll, B small
        # H-direction upsample for this row tile: (tH, Hin) @ (Hin, W), M = tH.
        up = jnp.dot(wh, t_ref[b], preferred_element_type=jnp.float32)   # (tH, W)
        r = real_ref[b].astype(jnp.float32)                              # (tH, W)
        mask = r < 1.0
        r_safe = jnp.where(mask, r, 1.0)          # keep masked-out lanes finite
        fpe = up + EPS
        # fused single divide: 1/r - 1/(f+eps) == ((f+eps) - r) / (r*(f+eps))
        diff = (fpe - r_safe) / (r_safe * fpe)
        sq = jnp.where(mask, diff * diff, 0.0)
        # sublane-grouped partial reduce -> (8, W): pure VALU adds, lane-dense.
        sum_acc = sum_acc + jnp.sum(sq.reshape(nsub, 8, W), axis=0)
        cnt_acc = cnt_acc + jnp.sum(mask.astype(jnp.float32).reshape(nsub, 8, W), axis=0)

    sum_ref[...] += sum_acc[None]
    cnt_ref[...] += cnt_acc[None]


def _choose_tiles(nc, hin, win, h, w, itemsize, *, max_b=32, tH_target=256,
                  vmem_budget=48 << 20):
    """Pick (B, tH) fitting a ~48 MiB VMEM budget (v7x-safe), G >= 2 if possible."""
    # keep the parallel group axis >= 2 whenever there is more than one image
    B = max(1, min(max_b, -(-nc // 2)))
    h8 = -(-h // 8) * 8
    tH = min(h8, max(8, (tH_target // 8) * 8))

    def footprint(B_, tH_):
        fake_blk = 2 * B_ * hin * win * itemsize      # double-buffered input
        real_blk = 2 * B_ * tH_ * w * itemsize        # double-buffered input
        wh_blk = 2 * tH_ * hin * 4
        wwt_blk = 2 * win * w * 4
        t_scr = B_ * hin * w * 4                      # per-group scratch
        outs = 2 * 2 * 8 * w * 4                      # two (1,8,W) accumulators
        work = 6 * tH_ * w * 4                        # up/diff/sq working set
        return fake_blk + real_blk + wh_blk + wwt_blk + t_scr + outs + work

    while footprint(B, tH) > vmem_budget and (B > 1 or tH > 8):
        if B > 1:
            B = max(1, B // 2)
        else:
            tH = max(8, tH // 2)
    return B, tH


def irmse(fake, real):
    n, c, hin, win = fake.shape
    n2, c2, h, w = real.shape
    assert (n, c) == (n2, c2)
    nc = n * c

    # NOTE: no dtype upcast here — blocks are cast to f32 inside the kernel.
    fake_g = fake.reshape(nc, hin, win)
    real_g = real.reshape(nc, h, w)

    wh = _bilinear_matrix(h, hin)                 # (H, Hin)
    ww_t = _bilinear_matrix(w, win).T             # (Win, W), transpose hoisted to host

    itemsize = max(np.dtype(fake.dtype).itemsize, np.dtype(real.dtype).itemsize)
    B, tH = _choose_tiles(nc, hin, win, h, w, itemsize)

    # pad the group count to a multiple of B (padded images fully masked out)
    nc_pad = -(-nc // B) * B
    if nc_pad != nc:
        fake_g = jnp.concatenate(
            [fake_g, jnp.zeros((nc_pad - nc, hin, win), fake_g.dtype)], axis=0)
        real_g = jnp.concatenate(
            [real_g, jnp.full((nc_pad - nc, h, w), 2.0, real_g.dtype)], axis=0)
    # pad H to a multiple of tH (padded rows: wh=0, real=2.0 -> masked out)
    h_pad = -(-h // tH) * tH
    if h_pad != h:
        real_g = jnp.concatenate(
            [real_g, jnp.full((nc_pad, h_pad - h, w), 2.0, real_g.dtype)], axis=1)
        wh = jnp.concatenate([wh, jnp.zeros((h_pad - h, hin), wh.dtype)], axis=0)

    G = nc_pad // B
    nH = h_pad // tH

    sum_p, cnt_p = pl.pallas_call(
        irmse_kernel,
        out_shape=(
            jax.ShapeDtypeStruct((G, 8, w), jnp.float32),
            jax.ShapeDtypeStruct((G, 8, w), jnp.float32),
        ),
        grid_spec=pltpu.PrefetchScalarGridSpec(
            num_scalar_prefetch=0,
            grid=(G, nH),                                   # reduction axis last
            in_specs=[
                pl.BlockSpec((B, hin, win), lambda g, hi: (g, 0, 0)),   # fake
                pl.BlockSpec((B, tH, w),   lambda g, hi: (g, hi, 0)),   # real (row-tiled)
                pl.BlockSpec((tH, hin),    lambda g, hi: (hi, 0)),      # Wh rows
                pl.BlockSpec((win, w),     lambda g, hi: (0, 0)),       # Ww^T
            ],
            out_specs=(
                pl.BlockSpec((1, 8, w), lambda g, hi: (g, 0, 0)),       # partial sum
                pl.BlockSpec((1, 8, w), lambda g, hi: (g, 0, 0)),       # partial count
            ),
            scratch_shapes=[pltpu.VMEM((B, hin, w), jnp.float32)],      # t = fake @ Ww^T
        ),
        compiler_params=pltpu.CompilerParams(
            dimension_semantics=("parallel", "arbitrary"),
            vmem_limit_bytes=64 << 20,        # lift the 16/32 MiB scoped defaults
        ),
    )(fake_g, real_g, wh, ww_t)

    # final cross-lane reduce + sqrt on the host side of the kernel.
    # (If no pixel has real < 1.0 this yields NaN, matching the torch edge case.)
    return jnp.sqrt(jnp.sum(sum_p) / jnp.sum(cnt_p))


def irmse_ref(fake, real):
    """Pure-JAX reference with the same bilinear weights."""
    _, _, hin, win = fake.shape
    _, _, h, w = real.shape
    wh = _bilinear_matrix(h, hin)
    ww = _bilinear_matrix(w, win)
    up = jnp.einsum('hH,ncHW,wW->nchw', wh, fake.astype(jnp.float32), ww)
    mask = real < 1.0
    cnt = jnp.sum(mask)
    r_safe = jnp.where(mask, real.astype(jnp.float32), 1.0)
    diff = 1.0 / r_safe - 1.0 / (up + EPS)
    sq = jnp.where(mask, jnp.abs(diff) ** 2, 0.0)
    return jnp.sqrt(jnp.sum(sq) / cnt)


if __name__ == "__main__":
    key = jax.random.PRNGKey(0)
    k1, k2 = jax.random.split(key)
    # fake is lower-resolution (gets bilinearly upsampled to real's size)
    fake = jax.random.uniform(k1, (2, 1, 8, 8), jnp.float32, minval=0.1, maxval=2.0)
    real = jax.random.uniform(k2, (2, 1, 16, 16), jnp.float32, minval=0.1, maxval=2.0)

    out = irmse(fake, real)
    out = jax.block_until_ready(out)

    ref = irmse_ref(fake, real)
    assert jnp.allclose(out, ref, rtol=1e-4, atol=1e-5), (out, ref)
    print("KERNEL_OK")
</pallas_src>

<mosaic_0001>
module attributes {stable_mosaic.version = 11 : i64} {
  func.func @irmse_kernel(%arg0: i32, %arg1: i32, %arg2: memref<1x8x8xf32, #tpu.memory_space<vmem>>, %arg3: memref<1x16x16xf32, #tpu.memory_space<vmem>>, %arg4: memref<16x8xf32, #tpu.memory_space<vmem>>, %arg5: memref<8x16xf32, #tpu.memory_space<vmem>>, %arg6: memref<1x8x16xf32, #tpu.memory_space<vmem>>, %arg7: memref<1x8x16xf32, #tpu.memory_space<vmem>>, %arg8: memref<1x8x16xf32, #tpu.memory_space<vmem>>) attributes {dimension_semantics = [#tpu.dimension_semantics<parallel>, #tpu.dimension_semantics<arbitrary>], iteration_bounds = array<i64: 2, 1>, scalar_prefetch = 0 : i64, scratch_operands = 1 : i64, tpu.core_type = #tpu.core_type<tc>, window_params = [{transform_indices = @transform_0, window_bounds = array<i64: 1, 8, 8>}, {transform_indices = @transform_1, window_bounds = array<i64: 1, 16, 16>}, {transform_indices = @transform_2, window_bounds = array<i64: 16, 8>}, {pipeline_mode = #tpu.pipeline_mode<synchronous>, transform_indices = @transform_3, window_bounds = array<i64: 8, 16>}, {transform_indices = @transform_4, window_bounds = array<i64: 1, 8, 16>}, {transform_indices = @transform_5, window_bounds = array<i64: 1, 8, 16>}]} {
    %c0_i32 = arith.constant 0 : i32
    %0 = arith.cmpi eq, %arg1, %c0_i32 : i32
    %1 = arith.extui %0 : i1 to i32
    %c0_i32_0 = arith.constant 0 : i32
    %2 = arith.cmpi ne, %1, %c0_i32_0 : i32
    scf.if %2 {
      %c0_28 = arith.constant 0 : index
      %c0_29 = arith.constant 0 : index
      %c0_30 = arith.constant 0 : index
      %39 = vector.load %arg2[%c0_28, %c0_29, %c0_30] : memref<1x8x8xf32, #tpu.memory_space<vmem>>, vector<1x8x8xf32>
      %40 = vector.shape_cast %39 : vector<1x8x8xf32> to vector<8x8xf32>
      %c0_31 = arith.constant 0 : index
      %c0_32 = arith.constant 0 : index
      %41 = vector.load %arg5[%c0_31, %c0_32] : memref<8x16xf32, #tpu.memory_space<vmem>>, vector<8x16xf32>
      %cst_33 = arith.constant dense<0.000000e+00> : vector<8x16xf32>
      %42 = tpu.matmul %40, %41, %cst_33 {dimension_numbers = #tpu.dot_dimension_numbers<[1], [0], [0], [1], [0, 0, 1, 1], [], []>} : vector<8x8xf32>, vector<8x16xf32>, vector<8x16xf32> -> vector<8x16xf32>
      %43 = vector.shape_cast %42 : vector<8x16xf32> to vector<1x8x16xf32>
      %c0_34 = arith.constant 0 : index
      %c0_35 = arith.constant 0 : index
      %c0_36 = arith.constant 0 : index
      %44 = vector.load %arg8[%c0_34, %c0_35, %c0_36] : memref<1x8x16xf32, #tpu.memory_space<vmem>>, vector<1x8x16xf32>
      tpu.vector_store %arg8[%c0_34, %c0_35, %c0_36], %43 {strides = array<i32>} : memref<1x8x16xf32, #tpu.memory_space<vmem>>, vector<1x8x16xf32>,
      %cst_37 = arith.constant 0.000000e+00 : f32
      %45 = vector.broadcast %cst_37 : f32 to vector<1x8x16xf32>
      %c0_38 = arith.constant 0 : index
      %c0_39 = arith.constant 0 : index
      %c0_40 = arith.constant 0 : index
      %46 = vector.load %arg6[%c0_38, %c0_39, %c0_40] : memref<1x8x16xf32, #tpu.memory_space<vmem>>, vector<1x8x16xf32>
      tpu.vector_store %arg6[%c0_38, %c0_39, %c0_40], %45 {strides = array<i32>} : memref<1x8x16xf32, #tpu.memory_space<vmem>>, vector<1x8x16xf32>,
      %cst_41 = arith.constant 0.000000e+00 : f32
      %47 = vector.broadcast %cst_41 : f32 to vector<1x8x16xf32>
      %c0_42 = arith.constant 0 : index
      %c0_43 = arith.constant 0 : index
      %c0_44 = arith.constant 0 : index
      %48 = vector.load %arg7[%c0_42, %c0_43, %c0_44] : memref<1x8x16xf32, #tpu.memory_space<vmem>>, vector<1x8x16xf32>
      tpu.vector_store %arg7[%c0_42, %c0_43, %c0_44], %47 {strides = array<i32>} : memref<1x8x16xf32, #tpu.memory_space<vmem>>, vector<1x8x16xf32>,
    } else {
    }
    %c0 = arith.constant 0 : index
    %c0_1 = arith.constant 0 : index
    %3 = vector.load %arg4[%c0, %c0_1] : memref<16x8xf32, #tpu.memory_space<vmem>>, vector<16x8xf32>
    %cst = arith.constant 0.000000e+00 : f32
    %4 = vector.broadcast %cst : f32 to vector<8x16xf32>
    %cst_2 = arith.constant 0.000000e+00 : f32
    %5 = vector.broadcast %cst_2 : f32 to vector<8x16xf32>
    %c0_3 = arith.constant 0 : index
    %c0_4 = arith.constant 0 : index
    %c0_5 = arith.constant 0 : index
    %6 = vector.load %arg8[%c0_3, %c0_4, %c0_5] : memref<1x8x16xf32, #tpu.memory_space<vmem>>, vector<1x8x16xf32>
    %7 = vector.shape_cast %6 : vector<1x8x16xf32> to vector<8x16xf32>
    %cst_6 = arith.constant dense<0.000000e+00> : vector<16x16xf32>
    %8 = tpu.matmul %3, %7, %cst_6 {dimension_numbers = #tpu.dot_dimension_numbers<[1], [0], [0], [1], [0, 0, 1, 1], [], []>} : vector<16x8xf32>, vector<8x16xf32>, vector<16x16xf32> -> vector<16x16xf32>
    %c0_7 = arith.constant 0 : index
    %c0_8 = arith.constant 0 : index
    %c0_9 = arith.constant 0 : index
    %9 = vector.load %arg3[%c0_7, %c0_8, %c0_9] : memref<1x16x16xf32, #tpu.memory_space<vmem>>, vector<1x16x16xf32>
    %10 = vector.shape_cast %9 : vector<1x16x16xf32> to vector<16x16xf32>
    %cst_10 = arith.constant 1.000000e+00 : f32
    %11 = vector.broadcast %cst_10 : f32 to vector<16x16xf32>
    %12 = arith.cmpf olt, %10, %11 : vector<16x16xf32>
    %cst_11 = arith.constant 1.000000e+00 : f32
    %13 = vector.broadcast %cst_11 : f32 to vector<16x16xf32>
    %14 = arith.select %12, %10, %13 : vector<16x16xi1>, vector<16x16xf32>
    %cst_12 = arith.constant 9.99999993E-9 : f32
    %15 = vector.broadcast %cst_12 : f32 to vector<16x16xf32>
    %16 = arith.addf %8, %15 : vector<16x16xf32>
    %17 = arith.subf %16, %14 : vector<16x16xf32>
    %18 = arith.mulf %14, %16 : vector<16x16xf32>
    %19 = arith.divf %17, %18 : vector<16x16xf32>
    %20 = arith.mulf %19, %19 : vector<16x16xf32>
    %cst_13 = arith.constant 0.000000e+00 : f32
    %21 = vector.broadcast %cst_13 : f32 to vector<16x16xf32>
    %22 = arith.select %12, %20, %21 : vector<16x16xi1>, vector<16x16xf32>
    %23 = vector.shape_cast %22 : vector<16x16xf32> to vector<2x8x16xf32>
    %cst_14 = arith.constant dense<0.000000e+00> : vector<8x16xf32>
    %24 = vector.multi_reduction <add>, %23, %cst_14 [0] : vector<2x8x16xf32> to vector<8x16xf32>
    %25 = arith.addf %4, %24 : vector<8x16xf32>
    %26 = arith.extui %12 : vector<16x16xi1> to vector<16x16xi32>
    %27 = arith.sitofp %26 : vector<16x16xi32> to vector<16x16xf32>
    %28 = vector.shape_cast %27 : vector<16x16xf32> to vector<2x8x16xf32>
    %cst_15 = arith.constant dense<0.000000e+00> : vector<8x16xf32>
    %29 = vector.multi_reduction <add>, %28, %cst_15 [0] : vector<2x8x16xf32> to vector<8x16xf32>
    %30 = arith.addf %5, %29 : vector<8x16xf32>
    %c0_16 = arith.constant 0 : index
    %c0_17 = arith.constant 0 : index
    %c0_18 = arith.constant 0 : index
    %31 = vector.load %arg6[%c0_16, %c0_17, %c0_18] : memref<1x8x16xf32, #tpu.memory_space<vmem>>, vector<1x8x16xf32>
    %32 = vector.shape_cast %25 : vector<8x16xf32> to vector<1x8x16xf32>
    %33 = arith.addf %31, %32 : vector<1x8x16xf32>
    %c0_19 = arith.constant 0 : index
    %c0_20 = arith.constant 0 : index
    %c0_21 = arith.constant 0 : index
    %34 = vector.load %arg6[%c0_19, %c0_20, %c0_21] : memref<1x8x16xf32, #tpu.memory_space<vmem>>, vector<1x8x16xf32>
    tpu.vector_store %arg6[%c0_19, %c0_20, %c0_21], %33 {strides = array<i32>} : memref<1x8x16xf32, #tpu.memory_space<vmem>>, vector<1x8x16xf32>,
    %c0_22 = arith.constant 0 : index
    %c0_23 = arith.constant 0 : index
    %c0_24 = arith.constant 0 : index
    %35 = vector.load %arg7[%c0_22, %c0_23, %c0_24] : memref<1x8x16xf32, #tpu.memory_space<vmem>>, vector<1x8x16xf32>
    %36 = vector.shape_cast %30 : vector<8x16xf32> to vector<1x8x16xf32>
    %37 = arith.addf %35, %36 : vector<1x8x16xf32>
    %c0_25 = arith.constant 0 : index
    %c0_26 = arith.constant 0 : index
    %c0_27 = arith.constant 0 : index
    %38 = vector.load %arg7[%c0_25, %c0_26, %c0_27] : memref<1x8x16xf32, #tpu.memory_space<vmem>>, vector<1x8x16xf32>
    tpu.vector_store %arg7[%c0_25, %c0_26, %c0_27], %37 {strides = array<i32>} : memref<1x8x16xf32, #tpu.memory_space<vmem>>, vector<1x8x16xf32>,
    return
  }
  func.func @transform_0(%arg0: i32, %arg1: i32) -> (i32, i32, i32) {
    %c0_i32 = arith.constant 0 : i32
    %c0_i32_0 = arith.constant 0 : i32
    %c0_i32_1 = arith.constant 0 : i32
    return %arg0, %c0_i32, %c0_i32_0 : i32, i32, i32
  }
  func.func @transform_1(%arg0: i32, %arg1: i32) -> (i32, i32, i32) {
    %c0_i32 = arith.constant 0 : i32
    %c0_i32_0 = arith.constant 0 : i32
    return %arg0, %arg1, %c0_i32 : i32, i32, i32
  }
  func.func @transform_2(%arg0: i32, %arg1: i32) -> (i32, i32) {
    %c0_i32 = arith.constant 0 : i32
    %c0_i32_0 = arith.constant 0 : i32
    return %arg1, %c0_i32 : i32, i32
  }
  func.func @transform_3(%arg0: i32, %arg1: i32) -> (i32, i32) {
    %c0_i32 = arith.constant 0 : i32
    %c0_i32_0 = arith.constant 0 : i32
    %c0_i32_1 = arith.constant 0 : i32
    return %c0_i32, %c0_i32_0 : i32, i32
  }
  func.func @transform_4(%arg0: i32, %arg1: i32) -> (i32, i32, i32) {
    %c0_i32 = arith.constant 0 : i32
    %c0_i32_0 = arith.constant 0 : i32
    %c0_i32_1 = arith.constant 0 : i32
    return %arg0, %c0_i32, %c0_i32_0 : i32, i32, i32
  }
  func.func @transform_5(%arg0: i32, %arg1: i32) -> (i32, i32, i32) {
    %c0_i32 = arith.constant 0 : i32
    %c0_i32_0 = arith.constant 0 : i32
    %c0_i32_1 = arith.constant 0 : i32
    return %arg0, %c0_i32, %c0_i32_0 : i32, i32, i32
  }
}

</mosaic_0001>

<bundles_post_ra>
// kernel: tpu_custom_call.1
= control target key start
LH: loop header
LB: loop body
LE: loop exit
PB: predicated region body
PF: predicated region fallthrough
CT: control target
= control target key end

     0   :  { %11 = vsyncpa [#allocation4], 0  ;;  %s1182_s0 = inlined_call_operand.vmem [shape: f32[2,8,8], index: 0, kind: input, shape index: {}]   ;;  %s1183_s1 = inlined_call_operand.hbm [shape: f32[2,16,16], index: 1, kind: input, shape index: {}]   ;;  %s1184_s2 = inlined_call_operand.vmem [shape: f32[16,8], index: 2, kind: input, shape index: {}]   ;;  %s1185_s3 = inlined_call_operand.vmem [shape: f32[8,16], index: 3, kind: input, shape index: {}]   ;;  %s1186_s4 = inlined_call_operand.hbm [shape: f32[2,8,16], index: 4, kind: output, shape index: {0}]   ;;  %s1187_s5 = inlined_call_operand.hbm [shape: f32[2,8,16], index: 5, kind: output, shape index: {1}]  }
   0x1   :  { %13 = vsyncpa [#allocation4 + $0x1], 0 }
   0x2   :  { %14 = vsyncpa [#allocation5], 0 }
   0x3   :  { %16 = vsyncpa [#allocation5 + $0x1], 0 }
   0x4   :  { %17 = vsyncpa [#allocation8], 0 }
   0x5   :  { %19 = vsyncpa [#allocation8 + $0x1], 0  ;;  %s980_s18 = smov 0   ;;  %s982_s19 = smov 0  }
   0x6   :  { %s984_s20 = smov 0   ;;  %s986_s21 = smov 0  }
   0x7   :  { %s988_s22 = smov 0   ;;  %s990_s23 = smov 0  }
   0x8 LB: > { %s688_s24 = sadd.s32 4294967295, %s941_s23   ;;  %s689_s25 = sadd.s32 4294967294, %s941_s23   ;;  %s941_s23 = sphi %s990_s23, %s25_s23   ;;  %s937_s22 = sphi %s988_s22, %s1200_s22   ;;  %s933_s21 = sphi %s986_s21, %s1199_s21   ;;  %s929_s20 = sphi %s984_s20, %s1198_s20   ;;  %s925_s19 = sphi %s982_s19, %s1197_s19   ;;  %s921_s18 = sphi %s980_s18, %s1196_s18  }
   0x9   : > { %s37_s26 = sadd.s32 1, %s937_s22  ;;  %s72_s27 = sadd.s32 1, %s929_s20 }
   0xa   : > { %p39_p0 = scmp.ge.s32.totalorder %s37_s26, 2  ;;  %p79_p1 = scmp.ne.s32.totalorder %s929_s20, %s925_s19 }
   0xb   : > { %p80_p2 = scmp.eq.s32.totalorder %s941_s23, 0  ;;  %p85_p3 = scmp.ne.s32.totalorder %s925_s19, %s921_s18 }
   0xc   : > { %s1202_s26 = smov (%p39_p0, %s37_s26), 0  ;;  %p86_p5 = scmp.eq.s32.totalorder %s688_s24, 0 }
   0xd   : > { %p1021_p4 = por %p80_p2, %p79_p1  ;;  %s67_s29 = ssub.s32 %s937_s22, %s1202_s26 }
   0xe   : > { %p156_p6 = scmp.eq.s32.totalorder %s688_s24, 1  ;;  %p70_p7 = scmp.eq.s32.totalorder %s67_s29, 0 }
   0xf   : > { %p1027_p8 = por %p86_p5, %p85_p3  ;;  %p162_p10 = scmp.eq.s32.totalorder %s689_s25, 1 }
  0x10   : > { %p1031_p9 = por %p156_p6, %p79_p1  ;;  %p745_p13 = scmp.lt.s32.totalorder %s941_s23, 2 }
  0x11   : > { %s1036_s7 = scalar_select %p70_p7, %s929_s20, %s72_s27  }
  0x12   : > { %p1038_p11 = por %p162_p10, %p85_p3  ;;  %s227_s9 = sand.u32 1, %s929_s20  }
  0x13   : > { %s693_s10 = sshll.u32 %s227_s9, 4  ;;  %s712_s11 = sshll.u32 %s937_s22, 8 }
  0x14   : > { %s239_s14 = scalar_lea.hbm %s1183_s1, %s712_s11  ;;  %s231_s15 = scalar_lea.vmem [#allocation3], %s693_s10 }
  0x15   : > { %s240_s16 = sshll.u32 %s231_s15, 4  ;;  %p1051_p0 = pnand %p745_p13, %p1021_p4  ;;  %s241_s16 = int_to_ptr.vmem [resolvable:$true] %s240_s16 }
  0x16   : > { %p696_p1 = scmp.ge.s32.totalorder %s941_s23, 1  ;;  %s228_s24 = scalar_lea.sflag [#allocation4], %s227_s9 }
  0x17   : > { %p805_p2 = pneg %p1051_p0  ;;  %s816_s25 = scalar_lea.vmem %s241_s16, 256 }
  0x18   : > { %p817_p3 = scmp.ne.s32.totalorder %s241_s16, %s816_s25  ;;  %s943_s27 = smov [#allocation3]  }
  0x19   : > { %s821_s29 = sshll.u32 %s943_s27, 4  ;;  %s822_s29 = int_to_ptr.vmem [resolvable:$false] %s821_s29 }
  0x1a   : > { %p819_p5 = pnand %p817_p3, %p805_p2  ;;  %s823_s10 = scalar_lea.vmem %s822_s29, 512 }
  0x1b   : > { %p824_p7 = scmp.lt.s32.totalorder %s241_s16, %s822_s29  ;;  %p825_p10 = scmp.lt.s32.totalorder %s823_s10, %s816_s25 }
  0x1c   : > { %p820_p6 = pneg %p819_p5 }
  0x1d   : > { %p826_p12 = por %p825_p10, %p824_p7 }
  0x1f   : > { %p827_p4 = pnand %p826_p12, %p820_p6 }
  0x21   : > { %830 = shalt.err (!%p827_p4)
}
  0x22   : > { %s944_s28 = smov 128   ;;  %s945_s9 = smov 8  }
  0x23   : > { %737 = dma.hbm_to_vmem [thread:$0]  (!%p1051_p0), %s239_s14, 256, %s241_s16, %s228_s24, %s944_s28, %s944_s28, %s945_s9  }
  0x24   : > { %p248_p13 = scmp.lt.s32.totalorder %s941_s23, 3 }
  0x26   : > { %p249_p2 = pnand %p696_p1, %p248_p13 }
  0x27   : > { %s1064_s11 = sand.u32 (!%p249_p2), 1, %s925_s19  }
  0x28   : > { %252 = sbr.rel (%p249_p2) target bundleno = 492 (0x1ec), region = 36  ;;  %s697_s12 = sshll.u32 (!%p249_p2), %s1064_s11, 4 }
  0x29   : > { %s255_s13 = scalar_lea.sflag (!%p249_p2), [#allocation4], %s1064_s11  ;;  %s258_s15 = scalar_lea.vmem (!%p249_p2), [#allocation3], %s697_s12 }
  0x2d   : > { %908 = dma.done.wait (%p1027_p8), %s255_s13, 256  }
  0x2e   : > { %910 = vsyncadd (%p1027_p8), %s255_s13, 4294967040  ;;  %p299_p12 = scmp.lt.s32.totalorder %s933_s21, 1  ;;  %v946_v0 = vmov 0.0   ;;  %vm947_vm0 = vmmov 0   ;;  %vm316_vm1 = vcmask 64512   ;;  %v315_v1 = vld [vmem:[%s1185_s3] sm:$0xff] }
  0x2f   : > { %718 = vmatprep.subr.mxu0 %v946_v0  ;;  %720 = vmatprep.mubr.msk.f32.mxu0 %vm947_vm0, %v946_v0  ;;  %v394_v3 = vld [vmem:[%s1184_s2] sm:$0xff]  ;;  %vm390_vm2 = vcmask 130048   ;;  %v395_v7 = vld [vmem:[%s1184_s2 + $0x8] sm:$0xff]  ;;  %s698_s12 = sshll.u32 %s1064_s11, 3  ;;  %s522_s27 = scalar_lea.sflag [#allocation8], %s1064_s11 }
  0x30   : > { %s300_s14 = scalar_select %p299_p12, %s933_s21, 1  ;;  %719 = vmatpush3.msra.mxu0 %v315_v1  ;;  %725 = vmatprep.mubr.msk.f32.mxu1 %vm316_vm1, %v394_v3  ;;  %v1088_v8 = vld [vmem:[%s258_s15 + $0x8] sm:$0xff]  ;;  %v1090_v9 = vld [vmem:[%s258_s15] sm:$0xff] }
  0x31   : > { %s1092_s13 = scalar_lea.vmem [#allocation6], %s698_s12  ;;  %vm400_vm3 = vcmp.lt.f32.partialorder %v1088_v8, 1.0  ;;  %vm399_vm4 = vcmp.lt.f32.partialorder %v1090_v9, 1.0  ;;  %s1188_s15 = sshll.u32 %s933_s21, 7 }
  0x32   : > { %s700_s16 = sshll.u32 %s300_s14, 3  ;;  %392 = vst.msk [vmem:[%s1092_s13] sm:$0xff] %vm390_vm2, %v946_v0  ;;  %s298_s14 = scalar_lea.vmem [#allocation7], %s698_s12  ;;  %v705_v10 = vsel %vm400_vm3, 1.0, %v946_v0  ;;  %v704_v12 = vsel %vm399_vm4, 1.0, %v946_v0 }
  0x33   : > { %s302_s25 = scalar_lea.vmem %s1182_s0, %s700_s16  ;;  %393 = vst.msk [vmem:[%s298_s14] sm:$0xff] %vm390_vm2, %v946_v0  ;;  %v507_v11 = vsel %vm390_vm2, %v705_v10, 0.0  ;;  %v506_v13 = vsel %vm390_vm2, %v704_v12, 0.0  ;;  %s546_s24 = scalar_lea.hbm %s1187_s5, %s1188_s15 }
  0x34   : > { %v314_v2 = vld [vmem:[%s302_s25] sm:$0xff]  ;;  %v508_v14 = vadd.f32 %v507_v11, %v506_v13  ;;  %s548_s25 = sshll.u32 %s298_s14, 4  ;;  %s948_s30 = smov [#allocation7]   ;;  %s549_s25 = int_to_ptr.vmem [resolvable:$true] %s548_s25 }
  0x35   : > { %721 = vmatmul.mubr.msk.f32.vlgmr.msra.gmra.mxu0 %vm316_vm1, %v314_v2  ;;  %s831_s29 = scalar_lea.vmem %s549_s25, 128  ;;  %s835_s10 = sshll.u32 %s948_s30, 4  ;;  %s836_s10 = int_to_ptr.vmem [resolvable:$false] %s835_s10 }
  0x36   : > { %p832_p8 = scmp.ne.s32.totalorder %s549_s25, %s831_s29  ;;  %s837_s28 = scalar_lea.vmem %s836_s10, 256 }
  0x37   : > { %p838_p3 = scmp.lt.s32.totalorder %s549_s25, %s836_s10  ;;  %p839_p5 = scmp.lt.s32.totalorder %s837_s28, %s831_s29 }
  0x38   : > { %p833_p0 = pnand %p832_p8, %p1031_p9 }
  0x39   : > { %p840_p6 = por %p839_p5, %p838_p3 }
  0x3a   : > { %v513_v15 = vld [vmem:[%s298_s14] sm:$0xff]  ;;  %p834_p1 = pneg %p833_p0 }
  0x3b   : > { %v514_v16 = vadd.f32 %v513_v15, %v508_v14 }
  0x3c   : > { %p841_p7 = pnand %p840_p6, %p834_p1 }
  0x3d   : > { %515 = vst.msk [vmem:[%s298_s14] sm:$0xff] %vm390_vm2, %v514_v16 }
  0xf5   : > { %v386_v4 = vpop.f32.mrf.mxu0 }
  0xf6   : > { %391 = vst.msk [vmem:[#allocation2] sm:$0xff] %vm390_vm2, %v386_v4 }
  0xf7   : > { %v722_v5 = vpop.f32.mrf.mxu0 }
  0xfd   : > { %v396_v6 = vld [vmem:[#allocation2] sm:$0xff] }
  0xfe   : > { %723 = vmatprep.subr.mxu1 %v396_v6 }
  0xff   : > { %724 = vmatpush3.msra.mxu1 %v396_v6 }
 0x100   : > { %726 = vmatmul.mubr.msk.f32.vlgmr.msra.gmra.mxu1 %vm316_vm1, %v395_v7 }
 0x101   : > { %844 = shalt.err (!%p841_p7)
}
 0x102   : > { %s845_s9 = scalar_lea.hbm %s546_s24, 128  ;;  %s849_s16 = scalar_lea.hbm %s1187_s5, 256 }
 0x103   : > { %p846_p10 = scmp.ne.s32.totalorder %s546_s24, %s845_s9  ;;  %p850_p2 = scmp.lt.s32.totalorder %s546_s24, %s1187_s5 }
 0x104   : > { %p851_p12 = scmp.lt.s32.totalorder %s849_s16, %s845_s9 }
 0x105   : > { %p847_p4 = pnand %p846_p10, %p1031_p9 }
 0x106   : > { %p852_p8 = por %p851_p12, %p850_p2 }
 0x107   : > { %p848_p13 = pneg %p847_p4 }
 0x109   : > { %p853_p0 = pnand %p852_p8, %p848_p13 }
 0x10b   : > { %856 = shalt.err (!%p853_p0)
}
 0x10c   : > { %731 = dma.vmem_to_hbm [thread:$0]  (%p1031_p9), %s549_s25, 128, %s546_s24, %s522_s27   ;;  %v402_v17 = vsel %vm400_vm3, %v1088_v8, 1.0  ;;  %v401_v20 = vsel %vm399_vm4, %v1090_v9, 1.0  ;;  %v510_v37 = vld [vmem:[%s1092_s13] sm:$0xff] }
 0x10d   : > { %s535_s15 = sshll.u32 %s1092_s13, 4  ;;  %s1194_s24 = sshll.u32 %s933_s21, 7  ;;  %s536_s15 = int_to_ptr.vmem [resolvable:$true] %s535_s15 }
 0x10e   : > { %s533_s29 = scalar_lea.hbm %s1186_s4, %s1194_s24  ;;  %s517_s30 = scalar_lea.sflag [#allocation5], %s1064_s11 }
 0x10f   : > { %s857_s10 = scalar_lea.vmem %s536_s15, 128  ;;  %s949_s28 = smov [#allocation6]  }
 0x110   : > { %p858_p1 = scmp.ne.s32.totalorder %s536_s15, %s857_s10  ;;  %s861_s9 = sshll.u32 %s949_s28, 4  ;;  %s862_s9 = int_to_ptr.vmem [resolvable:$false] %s861_s9 }
 0x111   : > { %s863_s12 = scalar_lea.vmem %s862_s9, 256  ;;  %p864_p6 = scmp.lt.s32.totalorder %s536_s15, %s862_s9 }
 0x112   : > { %p859_p3 = pnand %p858_p1, %p1031_p9  ;;  %p865_p7 = scmp.lt.s32.totalorder %s863_s12, %s857_s10 }
 0x114   : > { %p860_p5 = pneg %p859_p3  ;;  %p866_p10 = por %p865_p7, %p864_p6 }
 0x116   : > { %p867_p4 = pnand %p866_p10, %p860_p5 }
 0x1c0   : > { %v727_v18 = vpop.f32.mrf.mxu1 }
 0x1c1   : > { %v482_v19 = vadd.f32 1e-08, %v727_v18 }
 0x1c2   : > { %v476_v21 = vpop.f32.mrf.mxu1 }
 0x1c3   : > { %v488_v22 = vmul.f32 %v482_v19, %v402_v17  ;;  %v477_v23 = vadd.f32 1e-08, %v476_v21  ;;  %v486_v25 = vsub.f32 %v482_v19, %v402_v17 }
 0x1c5   : > { %799 = vrcp.f32 %v488_v22  ;;  %v487_v24 = vmul.f32 %v477_v23, %v401_v20  ;;  %v485_v28 = vsub.f32 %v477_v23, %v401_v20 }
 0x1c7   : > { %801 = vrcp.f32 %v487_v24 }
 0x1d2   : > { %v800_v26 = vpop.eup %799 }
 0x1d3   : > { %v492_v27 = vmul.f32 %v800_v26, %v486_v25 }
 0x1d4   : > { %v802_v29 = vpop.eup %801 }
 0x1d5   : > { %v494_v30 = vmul.f32 %v492_v27, %v492_v27  ;;  %v490_v31 = vmul.f32 %v802_v29, %v485_v28 }
 0x1d7   : > { %v496_v32 = vsel %vm400_vm3, %v494_v30, 0.0  ;;  %v493_v33 = vmul.f32 %v490_v31, %v490_v31 }
 0x1d8   : > { %v499_v35 = vsel %vm390_vm2, %v496_v32, 0.0 }
 0x1d9   : > { %v495_v34 = vsel %vm399_vm4, %v493_v33, 0.0 }
 0x1da   : > { %v498_v36 = vsel %vm390_vm2, %v495_v34, 0.0 }
 0x1db   : > { %v500_v38 = vadd.f32 %v499_v35, %v498_v36 }
 0x1dd   : > { %v511_v39 = vadd.f32 %v510_v37, %v500_v38 }
 0x1df   : > { %512 = vst.msk [vmem:[%s1092_s13] sm:$0xff] %vm390_vm2, %v511_v39 }
 0x1e0   : > { %870 = shalt.err (!%p867_p4)
}
 0x1e1   : > { %s871_s21 = scalar_lea.hbm %s533_s29, 128  ;;  %s875_s14 = scalar_lea.hbm %s1186_s4, 256 }
 0x1e2   : > { %p872_p13 = scmp.ne.s32.totalorder %s533_s29, %s871_s21  ;;  %p876_p8 = scmp.lt.s32.totalorder %s533_s29, %s1186_s4 }
 0x1e3   : > { %p877_p0 = scmp.lt.s32.totalorder %s875_s14, %s871_s21 }
 0x1e4   : > { %p873_p2 = pnand %p872_p13, %p1031_p9 }
 0x1e5   : > { %p878_p1 = por %p877_p0, %p876_p8 }
 0x1e6   : > { %p874_p12 = pneg %p873_p2 }
 0x1e8   : > { %p879_p3 = pnand %p878_p1, %p874_p12 }
 0x1ea   : > { %882 = shalt.err (!%p879_p3)
}
 0x1eb   : > { %730 = dma.vmem_to_hbm [thread:$0]  (%p1031_p9), %s536_s15, 128, %s533_s29, %s517_s30  }
 0x1ec PF: > { %s560_s24 = sand.u32 1, %s921_s18   ;;  %p1195_p5 = scmp.ge.s32.totalorder %s941_s23, 2 }
 0x1ed   : > { %s561_s25 = scalar_lea.sflag [#allocation5], %s560_s24 }
 0x1ee   : > { %p739_p6 = pnand %p1195_p5, %p1038_p11 }
 0x1f0   : > { %p740_p7 = pneg %p739_p6 }
 0x1f2   : > { %912 = dma.done.wait (%p740_p7), %s561_s25, 128  }
 0x1f3   : > { %914 = vsyncadd (%p740_p7), %s561_s25, 4294967168  ;;  %s570_s27 = scalar_lea.sflag [#allocation8], %s560_s24 }
 0x1f4   : > { %916 = dma.done.wait (%p740_p7), %s570_s27, 128  }
 0x1f5   : > { %918 = vsyncadd (%p740_p7), %s570_s27, 4294967168  ;;  %s25_s23 = sadd.s32 1, %s941_s23   ;;  %s1196_s18 = smov %s925_s19 }
 0x1f6   : > { %p22_p10 = scmp.ge.s32.totalorder %s25_s23, 4   ;;  %s1197_s19 = smov %s929_s20 }
 0x1f7   : > { %s1198_s20 = smov %s1036_s7  ;;  %s1199_s21 = smov %s937_s22 }
 0x1f8   : > { %s1200_s22 = smov %s1202_s26  ;;  %24 = sbr.rel (!%p22_p10) target bundleno = 8 (0x8), region = 108 }
 0x1fd   :  { %575 = vsyncpa [#allocation4], 1 }
 0x1fe   :  { %577 = vsyncpa [#allocation4 + $0x1], 1 }
 0x1ff   :  { %578 = vsyncpa [#allocation5], 1 }
 0x200   :  { %580 = vsyncpa [#allocation5 + $0x1], 1 }
 0x201   :  { %581 = vsyncpa [#allocation8], 1 }
 0x202   :  { %583 = vsyncpa [#allocation8 + $0x1], 1 }

</bundles_post_ra>
